<compile_context>
chip_gen: v6e
topology: v6e:2x2x1
jax: 0.10.0
libtpu: 0.0.40
codegen_flags: <defaults>
</compile_context>

<pallas_src>
import math

import jax
import jax.numpy as jnp
from jax.experimental import pallas as pl
from jax.experimental.pallas import tpu as pltpu


def _self_attention_kernel(x_ref, w_ref, bo_ref, out_ref, scores_ref):
    bb, seq, d = x_ref.shape
    ncols = w_ref.shape[1]

    x = x_ref[...]                                               # [bb, L, D] f32

    # Single fused projection (one weight DMA, one MXU stream):
    #   cols [0:D] -> x @ G          (G = Wq Wk^T / sqrt(dk), score path)
    #   col  [D]   -> x @ (Wv @ Wo)  (fused value/output head)
    # x is flattened to [bb*L, D] so all rows share one MXU stream.
    proj = jnp.dot(x.reshape(bb * seq, d), w_ref[...],
                   preferred_element_type=jnp.float32)           # [bb*L, ncols]
    proj = proj.reshape(bb, seq, ncols)
    xg = proj[..., :d]                                           # [bb, L, D]
    xv = proj[..., d]                                            # [bb, L]

    # scores = softmax_k( (x @ G) @ x^T ), numerically stable, exact denominator
    s = jnp.einsum('bqd,bkd->bqk', xg, x,
                   preferred_element_type=jnp.float32)           # [bb, L, L]
    s = s - jnp.max(s, axis=-1, keepdims=True)
    e = jnp.exp(s)
    p = e / jnp.sum(e, axis=-1, keepdims=True)

    # out = sigmoid(scores @ (x @ Wv @ Wo) + b): VPU mul + lane reduce,
    # no 1-column MXU matmul.
    logits = jnp.sum(p * xv[:, None, :], axis=-1) + bo_ref[0]    # [bb, L]

    out_ref[...] = jax.nn.sigmoid(logits)[:, None, :].astype(out_ref.dtype)
    scores_ref[...] = p.astype(scores_ref.dtype)


def _default_batch_parallel() -> bool:
    # v7x has 2 TensorCores/chip: grid=(B,) "parallel" halves wall time there.
    # Single-TC v5e/v6e prefer a single grid step (no per-step pipeline cost).
    try:
        kind = jax.devices()[0].device_kind.lower()
    except Exception:
        return False
    return ("v7" in kind) or ("7x" in kind)


def self_attention_forward(x, wk, wq, wv, wo, bo, dk, batch_parallel=None):
    """x: [B, L, D]; wk/wq/wv: [D, A]; wo: [A, 1]; bo: [1]. Returns (out, scores)."""
    B, L, D = x.shape
    if batch_parallel is None:
        batch_parallel = _default_batch_parallel()

    # Constant weight prep (plain JAX, done once / folded by XLA).
    # HIGHEST precision keeps the folded contractions in true f32.
    hp = jax.lax.Precision.HIGHEST
    g = jnp.dot(wq, wk.T, precision=hp) * (1.0 / math.sqrt(dk))   # [D, D]
    wvo = jnp.dot(wv, wo, precision=hp)                           # [D, 1]
    w = jnp.concatenate([g, wvo], axis=1).astype(jnp.float32)     # [D, D+1]
    ncols = ((w.shape[1] + 127) // 128) * 128                     # lane-dense pad
    w = jnp.pad(w, ((0, 0), (0, ncols - w.shape[1])))
    bo_s = jnp.reshape(bo, (1,)).astype(jnp.float32)               # SMEM scalar

    bb = 1 if batch_parallel else B          # batch elements per grid step
    grid = (B // bb,)

    out_b1l, scores = pl.pallas_call(
        _self_attention_kernel,
        out_shape=(
            jax.ShapeDtypeStruct((B, 1, L), jnp.float32),
            jax.ShapeDtypeStruct((B, L, L), jnp.float32),
        ),
        grid_spec=pltpu.PrefetchScalarGridSpec(
            num_scalar_prefetch=0,
            grid=grid,
            in_specs=[
                pl.BlockSpec((bb, L, D), lambda b: (b, 0, 0)),       # x
                pl.BlockSpec((D, ncols), lambda b: (0, 0)),          # fused G | Wv@Wo
                pl.BlockSpec(memory_space=pltpu.MemorySpace.SMEM),   # bias scalar
            ],
            out_specs=[
                pl.BlockSpec((bb, 1, L), lambda b: (b, 0, 0)),
                pl.BlockSpec((bb, L, L), lambda b: (b, 0, 0)),
            ],
        ),
        compiler_params=pltpu.CompilerParams(
            dimension_semantics=("parallel",)),
    )(x.astype(jnp.float32), w, bo_s)

    out = jnp.reshape(out_b1l, (B, L, 1))   # same element order; module layout
    return out, scores


def _reference_forward(x, wk, wq, wv, wo, bo, dk):
    hp = jax.lax.Precision.HIGHEST
    k = jnp.einsum("bld,da->bla", x, wk, precision=hp)
    q = jnp.einsum("bld,da->bla", x, wq, precision=hp)
    v = jnp.einsum("bld,da->bla", x, wv, precision=hp)
    s = jnp.einsum("bmd,bld->bml", q, k, precision=hp) / math.sqrt(dk)
    p = jax.nn.softmax(s, axis=-1)
    o = jnp.einsum("bml,bla->bma", p, v, precision=hp)
    out = jax.nn.sigmoid(jnp.einsum("bma,ao->bmo", o, wo, precision=hp) + bo)
    return out, p


if __name__ == "__main__":
    # Module config: the hard-coded nn.Linear(500, 1) in `outt` forces
    # attention_size == 500 for the forward pass to be well-formed.
    B, L = 2, 8                 # batch, sequence length
    input_size = 64             # D (== dk)
    attention_size = 500        # A

    key = jax.random.PRNGKey(0)
    kx, kkqv, kout = jax.random.split(key, 3)

    # Deterministic xavier_normal_ init (weights), zeros (bias) — like
    # reset_parameters() in the PyTorch module.
    std_kqv = math.sqrt(2.0 / (input_size + 3 * attention_size))
    w_kqv_t = jax.random.normal(
        kkqv, (3 * attention_size, input_size), jnp.float32) * std_kqv  # torch layout
    w_kqv = w_kqv_t.T                                                   # [D, 3A]
    wk = w_kqv[:, 0 * attention_size:1 * attention_size]
    wq = w_kqv[:, 1 * attention_size:2 * attention_size]
    wv = w_kqv[:, 2 * attention_size:3 * attention_size]

    std_out = math.sqrt(2.0 / (attention_size + 1))
    w_out_t = jax.random.normal(kout, (1, attention_size), jnp.float32) * std_out
    wo = w_out_t.T                                                      # [A, 1]
    bo = jnp.zeros((1,), jnp.float32)

    x = jax.random.normal(kx, (B, L, input_size), jnp.float32)

    out, scores = self_attention_forward(x, wk, wq, wv, wo, bo, dk=input_size)
    out = jax.block_until_ready(out)
    scores = jax.block_until_ready(scores)

    ref_out, ref_scores = _reference_forward(x, wk, wq, wv, wo, bo, dk=input_size)
    assert out.shape == (B, L, 1) and scores.shape == (B, L, L)
    # Tolerance covers the intentional f32 reassociation of the folded
    # (Wq @ Wk^T)/sqrt(dk) and (Wv @ Wo) constants vs. the reference order.
    assert jnp.allclose(out, ref_out, atol=2e-3, rtol=2e-3)
    assert jnp.allclose(scores, ref_scores, atol=2e-3, rtol=2e-3)

    print("KERNEL_OK")
</pallas_src>

<mosaic_0001>
module attributes {stable_mosaic.version = 11 : i64} {
  func.func @_self_attention_kernel(%arg0: i32, %arg1: memref<2x8x64xf32, #tpu.memory_space<vmem>>, %arg2: memref<64x128xf32, #tpu.memory_space<vmem>>, %arg3: memref<1xf32, #tpu.memory_space<smem>>, %arg4: memref<2x1x8xf32, #tpu.memory_space<vmem>>, %arg5: memref<2x8x8xf32, #tpu.memory_space<vmem>>) attributes {dimension_semantics = [#tpu.dimension_semantics<parallel>], iteration_bounds = array<i64: 1>, scalar_prefetch = 0 : i64, scratch_operands = 0 : i64, tpu.core_type = #tpu.core_type<tc>, window_params = [{transform_indices = @transform_0, window_bounds = array<i64: 2, 8, 64>}, {pipeline_mode = #tpu.pipeline_mode<synchronous>, transform_indices = @transform_1, window_bounds = array<i64: 64, 128>}, {transform_indices = @transform_2, window_bounds = array<i64: 1>}, {transform_indices = @transform_3, window_bounds = array<i64: 2, 1, 8>}, {transform_indices = @transform_4, window_bounds = array<i64: 2, 8, 8>}]} {
    %c0 = arith.constant 0 : index
    %c0_0 = arith.constant 0 : index
    %c0_1 = arith.constant 0 : index
    %0 = vector.load %arg1[%c0, %c0_0, %c0_1] : memref<2x8x64xf32, #tpu.memory_space<vmem>>, vector<2x8x64xf32>
    %1 = vector.shape_cast %0 : vector<2x8x64xf32> to vector<16x64xf32>
    %c0_2 = arith.constant 0 : index
    %c0_3 = arith.constant 0 : index
    %2 = vector.load %arg2[%c0_2, %c0_3] : memref<64x128xf32, #tpu.memory_space<vmem>>, vector<64x128xf32>
    %cst = arith.constant dense<0.000000e+00> : vector<16x128xf32>
    %3 = tpu.matmul %1, %2, %cst {dimension_numbers = #tpu.dot_dimension_numbers<[1], [0], [0], [1], [0, 0, 1, 1], [], []>} : vector<16x64xf32>, vector<64x128xf32>, vector<16x128xf32> -> vector<16x128xf32>
    %4 = vector.shape_cast %3 : vector<16x128xf32> to vector<2x8x128xf32>
    %5 = vector.extract_strided_slice %4 {offsets = [0, 0, 0], sizes = [2, 8, 64], strides = [1, 1, 1]} : vector<2x8x128xf32> to vector<2x8x64xf32>
    %6 = vector.extract_strided_slice %4 {offsets = [0, 0, 64], sizes = [2, 8, 1], strides = [1, 1, 1]} : vector<2x8x128xf32> to vector<2x8x1xf32>
    %7 = vector.shape_cast %6 : vector<2x8x1xf32> to vector<2x8xf32>
    "tpu.trace_start"() <{level = 10 : i32, message = "bqd,bkd->bqk"}> : () -> ()
    %cst_4 = arith.constant dense<0.000000e+00> : vector<2x8x8xf32>
    %8 = tpu.matmul %5, %0, %cst_4 {dimension_numbers = #tpu.dot_dimension_numbers<[2], [2], [1], [1], [0, 0, 0, 1, 1, 1], [0], [0]>} : vector<2x8x64xf32>, vector<2x8x64xf32>, vector<2x8x8xf32> -> vector<2x8x8xf32>
    "tpu.trace_stop"() : () -> ()
    %cst_5 = arith.constant dense<0xFF800000> : vector<2x8xf32>
    %9 = vector.multi_reduction <maximumf>, %8, %cst_5 [2] : vector<2x8x8xf32> to vector<2x8xf32>
    %10 = vector.shape_cast %9 : vector<2x8xf32> to vector<2x8x1xf32>
    %11 = vector.broadcast %10 : vector<2x8x1xf32> to vector<2x8x8xf32>
    %12 = arith.subf %8, %11 : vector<2x8x8xf32>
    %13 = math.exp %12 : vector<2x8x8xf32>
    %cst_6 = arith.constant dense<0.000000e+00> : vector<2x8xf32>
    %14 = vector.multi_reduction <add>, %13, %cst_6 [2] : vector<2x8x8xf32> to vector<2x8xf32>
    %15 = vector.shape_cast %14 : vector<2x8xf32> to vector<2x8x1xf32>
    %16 = vector.broadcast %15 : vector<2x8x1xf32> to vector<2x8x8xf32>
    %17 = arith.divf %13, %16 : vector<2x8x8xf32>
    %18 = vector.shape_cast %7 : vector<2x8xf32> to vector<2x1x8xf32>
    %19 = vector.broadcast %18 : vector<2x1x8xf32> to vector<2x8x8xf32>
    %20 = arith.mulf %17, %19 : vector<2x8x8xf32>
    %cst_7 = arith.constant dense<0.000000e+00> : vector<2x8xf32>
    %21 = vector.multi_reduction <add>, %20, %cst_7 [2] : vector<2x8x8xf32> to vector<2x8xf32>
    %c0_8 = arith.constant 0 : index
    %22 = memref.load %arg3[%c0_8] : memref<1xf32, #tpu.memory_space<smem>>
    %23 = vector.broadcast %22 : f32 to vector<2x8xf32>
    %24 = arith.addf %21, %23 : vector<2x8xf32>
    %25 = arith.negf %24 : vector<2x8xf32>
    %26 = math.exp %25 : vector<2x8xf32>
    %cst_9 = arith.constant 1.000000e+00 : f32
    %27 = vector.broadcast %cst_9 : f32 to vector<2x8xf32>
    %28 = arith.addf %27, %26 : vector<2x8xf32>
    %29 = arith.divf %27, %28 : vector<2x8xf32>
    %30 = vector.shape_cast %29 : vector<2x8xf32> to vector<2x1x8xf32>
    %c0_10 = arith.constant 0 : index
    %c0_11 = arith.constant 0 : index
    %c0_12 = arith.constant 0 : index
    %31 = vector.load %arg4[%c0_10, %c0_11, %c0_12] : memref<2x1x8xf32, #tpu.memory_space<vmem>>, vector<2x1x8xf32>
    tpu.vector_store %arg4[%c0_10, %c0_11, %c0_12], %30 {strides = array<i32>} : memref<2x1x8xf32, #tpu.memory_space<vmem>>, vector<2x1x8xf32>,
    %c0_13 = arith.constant 0 : index
    %c0_14 = arith.constant 0 : index
    %c0_15 = arith.constant 0 : index
    %32 = vector.load %arg5[%c0_13, %c0_14, %c0_15] : memref<2x8x8xf32, #tpu.memory_space<vmem>>, vector<2x8x8xf32>
    tpu.vector_store %arg5[%c0_13, %c0_14, %c0_15], %17 {strides = array<i32>} : memref<2x8x8xf32, #tpu.memory_space<vmem>>, vector<2x8x8xf32>,
    return
  }
  func.func @transform_0(%arg0: i32) -> (i32, i32, i32) {
    %c0_i32 = arith.constant 0 : i32
    %c0_i32_0 = arith.constant 0 : i32
    %c0_i32_1 = arith.constant 0 : i32
    return %arg0, %c0_i32, %c0_i32_0 : i32, i32, i32
  }
  func.func @transform_1(%arg0: i32) -> (i32, i32) {
    %c0_i32 = arith.constant 0 : i32
    %c0_i32_0 = arith.constant 0 : i32
    %c0_i32_1 = arith.constant 0 : i32
    return %c0_i32, %c0_i32_0 : i32, i32
  }
  func.func @transform_2(%arg0: i32) -> i32 {
    %c0_i32 = arith.constant 0 : i32
    %c0_i32_0 = arith.constant 0 : i32
    return %c0_i32 : i32
  }
  func.func @transform_3(%arg0: i32) -> (i32, i32, i32) {
    %c0_i32 = arith.constant 0 : i32
    %c0_i32_0 = arith.constant 0 : i32
    %c0_i32_1 = arith.constant 0 : i32
    return %arg0, %c0_i32, %c0_i32_0 : i32, i32, i32
  }
  func.func @transform_4(%arg0: i32) -> (i32, i32, i32) {
    %c0_i32 = arith.constant 0 : i32
    %c0_i32_0 = arith.constant 0 : i32
    %c0_i32_1 = arith.constant 0 : i32
    return %arg0, %c0_i32, %c0_i32_0 : i32, i32, i32
  }
}

</mosaic_0001>

<bundles_post_ra>
// kernel: tpu_custom_call.1
= control target key start
LH: loop header
LB: loop body
LE: loop exit
PB: predicated region body
PF: predicated region fallthrough
CT: control target
= control target key end

     0   :  { %11 = vsyncpa [#allocation4], 0  ;;  %s661_s0 = inlined_call_operand.hbm [shape: f32[2,8,64], index: 0, kind: input, shape index: {}]   ;;  %s662_s1 = inlined_call_operand.hbm [shape: f32[64,128], index: 1, kind: input, shape index: {}]   ;;  %s663_s2 = inlined_call_operand.<no memory space> [shape: f32[1], index: 2, kind: input, shape index: {}]   ;;  %s664_s3 = inlined_call_operand.hbm [shape: f32[2,1,8], index: 3, kind: output, shape index: {0}]   ;;  %s665_s4 = inlined_call_operand.hbm [shape: f32[2,8,8], index: 4, kind: output, shape index: {1}]  }
   0x1   :  { %12 = vsyncpa [#allocation7], 0 }
   0x2   :  { %13 = vsyncpa [#allocation5], 0 }
   0x3   :  { %14 = vsyncpa [#allocation10], 0  ;;  %s587_s15 = smov [#allocation3]  }
   0x4   :  { %s20_s16 = sshll.u32 %s587_s15, 4  ;;  %s21_s16 = int_to_ptr.vmem [resolvable:$true] %s20_s16 }
   0x5   :  { %s507_s17 = scalar_lea.vmem %s21_s16, 256  ;;  %p512_p1 = scmp.lt.s32.totalorder %s21_s16, %s21_s16 }
   0x6   :  { %p508_p0 = scmp.ne.s32.totalorder %s21_s16, %s507_s17  ;;  %p513_p2 = scmp.lt.s32.totalorder %s507_s17, %s507_s17 }
   0x8   :  { %p514_p3 = por %p513_p2, %p512_p1 }
   0xa   :  { %p515_p4 = pnand %p514_p3, %p508_p0 }
   0xc   :  { %518 = shalt.err (!%p515_p4)
}
   0xd   :  { %s588_s18 = smov 128   ;;  %s589_s19 = smov 8  }
   0xe   :  { %26 = dma.hbm_to_vmem [thread:$0]  %s661_s0, 256, %s21_s16, [#allocation4], %s588_s18, %s588_s18, %s589_s19  }
   0xf   :  { %s590_s22 = smov [#allocation6]  }
  0x10   :  { %s32_s23 = sshll.u32 %s590_s22, 4  ;;  %s33_s23 = int_to_ptr.vmem [resolvable:$true] %s32_s23 }
  0x11   :  { %s527_s24 = scalar_lea.vmem %s33_s23, 1024  ;;  %p532_p6 = scmp.lt.s32.totalorder %s33_s23, %s33_s23 }
  0x12   :  { %p528_p5 = scmp.ne.s32.totalorder %s33_s23, %s527_s24  ;;  %p533_p7 = scmp.lt.s32.totalorder %s527_s24, %s527_s24 }
  0x14   :  { %p534_p8 = por %p533_p7, %p532_p6 }
  0x16   :  { %p535_p9 = pnand %p534_p8, %p528_p5 }
  0x18   :  { %538 = shalt.err (!%p535_p9)
}
  0x19   :  { %38 = dma.hbm_to_vmem [thread:$0]  %s662_s1, 1024, %s33_s23, [#allocation7], %s588_s18, %s588_s18, %s589_s19  }
  0x1a   :  { %579 = dma.done.wait [#allocation4], 256  }
  0x1b   :  { %580 = vsyncadd [#allocation4], 4294967040 }
  0x1c   :  { %581 = dma.done.wait [#allocation7], 1024  }
  0x1d   :  { %582 = vsyncadd [#allocation7], 4294966272  ;;  %v591_v0 = vmov 0.0   ;;  %v56_v1 = vld [vmem:[#allocation6 + $0x38] sm:$0xff]  ;;  %v55_v2 = vld [vmem:[#allocation6 + $0x30] sm:$0xff]  ;;  %vm57_vm0 = vcmask 523264   ;;  %v314_v31 = vlaneseq }
  0x1e   :  { %460 = vmatprep.subr.mxu1 %v591_v0  ;;  %441 = vmatprep.subr.mxu0 %v56_v1  ;;  %v54_v3 = vld [vmem:[#allocation6 + $0x28] sm:$0xff]  ;;  %v47_v4 = vld [vmem:[#allocation3] sm:$0xff]  ;;  %v53_v5 = vld [vmem:[#allocation6 + $0x20] sm:$0xff]  ;;  %vm592_vm1 = vmmov 0   ;;  %v593_v13 = vmov 64   ;;  %vm285_vm2 = vcmask 64512  }
  0x1f   :  { %442 = vmatpush3.msra.mxu0 %v56_v1  ;;  %457 = vmatprep.mubr.msk.f32.mxu0 %vm57_vm0, %v47_v4  ;;  %v52_v6 = vld [vmem:[#allocation6 + $0x18] sm:$0xff]  ;;  %v51_v7 = vld [vmem:[#allocation6 + $0x10] sm:$0xff]  ;;  %v50_v8 = vld [vmem:[#allocation6 + $0x8] sm:$0xff]  ;;  %v315_v33 = vand.u32 127, %v314_v31  ;;  %v317_v34 = vshrl.u32 %v314_v31, 7  ;;  %s594_s0 = smov [#allocation9]  }
  0x20   :  { %443 = vmatprep.subr.mxu0 %v55_v2  ;;  %461 = vmatpush3.xpose.msk.msra.mxu1 %vm57_vm0, %v47_v4  ;;  %v49_v9 = vld [vmem:[#allocation6] sm:$0xff]  ;;  %v48_v10 = vld [vmem:[#allocation3 + $0x8] sm:$0xff]  ;;  %s402_s1 = sshll.u32 %s594_s0, 4  ;;  %s403_s1 = int_to_ptr.vmem [resolvable:$true] %s402_s1 }
  0x21   :  { %444 = vmatpush3.msra.mxu0 %v55_v2  ;;  %465 = vmatprep.subr.mxu1 %v591_v0  ;;  %v318_v35 = vsub.s32 %v315_v33, %v317_v34  ;;  %s539_s27 = scalar_lea.vmem %s403_s1, 256  ;;  %p544_p11 = scmp.lt.s32.totalorder %s403_s1, %s403_s1 }
  0x22   :  { %445 = vmatprep.subr.mxu0 %v54_v3  ;;  %462 = vmatprep.mubr.msk.f32.mxu1 %vm592_vm1, %v591_v0  ;;  %p540_p10 = scmp.ne.s32.totalorder %s403_s1, %s539_s27  ;;  %p545_p12 = scmp.lt.s32.totalorder %s539_s27, %s539_s27 }
  0x23   :  { %446 = vmatpush3.msra.mxu0 %v54_v3  ;;  %481 = vset.pattern.permute.xlu0 %v593_v13 }
  0x24   :  { %447 = vmatprep.subr.mxu0 %v53_v5  ;;  %482 = vset.pattern.permute.xlu1 %v593_v13  ;;  %p546_p13 = por %p545_p12, %p544_p11 }
  0x25   :  { %448 = vmatpush3.msra.mxu0 %v53_v5 }
  0x26   :  { %449 = vmatprep.subr.mxu0 %v52_v6  ;;  %p547_p0 = pnand %p546_p13, %p540_p10 }
  0x27   :  { %450 = vmatpush3.msra.mxu0 %v52_v6 }
  0x28   :  { %451 = vmatprep.subr.mxu0 %v51_v7 }
  0x29   :  { %452 = vmatpush3.msra.mxu0 %v51_v7 }
  0x2a   :  { %453 = vmatprep.subr.mxu0 %v50_v8 }
  0x2b   :  { %454 = vmatpush3.msra.mxu0 %v50_v8 }
  0x2c   :  { %455 = vmatprep.subr.mxu0 %v49_v9 }
  0x2d   :  { %456 = vmatpush3.msra.mxu0 %v49_v9 }
  0x2e   :  { %458 = vmatmul.mubr.msk.f32.vlgmr.msra.gmra.mxu0 %vm57_vm0, %v48_v10 }
  0xee   :  { %v459_v11 = vpop.f32.mrf.mxu0 }
  0xf0   :  { %v130_v12 = vpop.f32.mrf.mxu0 }
  0xf1   :  { %463 = vmatmul.mubr.msk.f32.vlgmr.msra.gmra.mxu1 %vm57_vm0, %v130_v12 }
  0xf2   :  { %466 = vmatpush3.xpose.msk.msra.mxu1 %vm57_vm0, %v48_v10  ;;  %467 = vmatprep.mubr.msk.f32.mxu1 %vm592_vm1, %v591_v0 }
  0xf5   :  { %468 = vmatmul.mubr.msk.f32.vlgmr.msra.gmra.mxu1 %vm57_vm0, %v459_v11 }
 0x1b1   :  { %v208_v14 = vpop.f32.mrf.mxu1 }
 0x1b2   :  { %v286_v15 = vsel %vm285_vm2, %v208_v14, -inf }
 0x1b3   :  { %287 = vmax.xlane.f32.xlu0 %v286_v15  ;;  %v464_v16 = vpop.f32.mrf.mxu1 }
 0x1b5   :  { %v281_v17 = vpop.f32.mrf.mxu1 }
 0x1b6   :  { %v289_v18 = vsel %vm285_vm2, %v281_v17, -inf }
 0x1b7   :  { %290 = vmax.xlane.f32.xlu0 %v289_v18  ;;  %v469_v19 = vpop.f32.mrf.mxu1 }
 0x1cd   :  { %309 = vperm.xlu0 %481, %v130_v12  }
 0x23c   :  { %v288_v20 = vpop.xlane.xlu0 %287 }
 0x23d   :  { %v292_v21 = vsub.f32 %v208_v14, %v288_v20 }
 0x23f   :  { %v294_v22 = vmul.f32 1.442695, %v292_v21 }
 0x240   :  { %v291_v23 = vpop.xlane.xlu0 %290 }
 0x241   :  { %483 = vpow2.f32 %v294_v22  ;;  %v293_v24 = vsub.f32 %v281_v17, %v291_v23 }
 0x243   :  { %v296_v25 = vmul.f32 1.442695, %v293_v24 }
 0x245   :  { %485 = vpow2.f32 %v296_v25 }
 0x248   :  { %v310_v36 = vpop.permute.xlu0 %309 }
 0x249   :  { %v319_v38 = vrot.slane %v310_v36, %v318_v35 }
 0x24e   :  { %v484_v26 = vpop.eup %483 }
 0x24f   :  { %v298_v27 = vsel %vm285_vm2, %v484_v26, 0.0 }
 0x250   :  { %299 = vadd.xlane.f32.xlu1 %v298_v27 }
 0x252   :  { %v486_v28 = vpop.eup %485 }
 0x253   :  { %v301_v29 = vsel %vm285_vm2, %v486_v28, 0.0 }
 0x254   :  { %302 = vadd.xlane.f32.xlu1 %v301_v29 }
 0x265   :  { %312 = vperm.xlu1 %482, %v459_v11  }
 0x2d9   :  { %v300_v30 = vpop.xlane.xlu1 %299 }
 0x2da   :  { %487 = vrcp.f32 %v300_v30 }
 0x2dd   :  { %v303_v32 = vpop.xlane.xlu1 %302 }
 0x2de   :  { %489 = vrcp.f32 %v303_v32 }
 0x2e1   :  { %v313_v40 = vpop.permute.xlu1 %312 }
 0x2e2   :  { %v323_v43 = vrot.slane %v313_v40, %v318_v35 }
 0x2e7   :  { %v488_v37 = vpop.eup %487 }
 0x2e8   :  { %v305_v39 = vmul.f32 %v488_v37, %v484_v26 }
 0x2ea   :  { %v344_v41 = vmul.f32 %v319_v38, %v305_v39  ;;  %383 = vst.msk [vmem:[#allocation9] sm:$0xff] %vm285_vm2, %v305_v39 }
 0x2eb   :  { %v490_v42 = vpop.eup %489 }
 0x2ec   :  { %v346_v44 = vsel %vm285_vm2, %v344_v41, 0.0  ;;  %v307_v45 = vmul.f32 %v490_v42, %v486_v28 }
 0x2ed   :  { %347 = vadd.xlane.f32.xlu1 %v346_v44 }
 0x2ee   :  { %v345_v46 = vmul.f32 %v323_v43, %v307_v45  ;;  %384 = vst.msk [vmem:[#allocation9 + $0x8] sm:$0xff] %vm285_vm2, %v307_v45 }
 0x2f0   :  { %v349_v47 = vsel %vm285_vm2, %v345_v46, 0.0 }
 0x2f1   :  { %350 = vadd.xlane.f32.xlu0 %v349_v47 }
 0x2f2   :  { %550 = shalt.err (!%p547_p0)
}
 0x2f3   :  { %408 = dma.vmem_to_hbm [thread:$0]  %s403_s1, 256, %s665_s4, [#allocation10], %s588_s18, %s588_s18, %s589_s19   ;;  %vm380_vm3 = vcmask 57344  }
 0x2f4   :  { %v353_v48 = vstv %s663_s2  ;;  %s595_s4 = smov [#allocation8]  }
 0x2f5   :  { %s390_s6 = sshll.u32 %s595_s4, 4  ;;  %s391_s6 = int_to_ptr.vmem [resolvable:$true] %s390_s6 }
 0x2f6   :  { %s559_s2 = scalar_lea.vmem %s391_s6, 32  ;;  %p564_p2 = scmp.lt.s32.totalorder %s391_s6, %s391_s6 }
 0x2f7   :  { %p560_p1 = scmp.ne.s32.totalorder %s391_s6, %s559_s2  ;;  %p565_p3 = scmp.lt.s32.totalorder %s559_s2, %s559_s2 }
 0x2f9   :  { %p566_p4 = por %p565_p3, %p564_p2 }
 0x2fb   :  { %p567_p5 = pnand %p566_p4, %p560_p1 }
 0x376   :  { %v348_v49 = vpop.xlane.xlu1 %347 }
 0x377   :  { %v354_v50 = vadd.f32 %v353_v48, %v348_v49 }
 0x379   :  { %v425_v51 = vmul.f32 -1.442695, %v354_v50 }
 0x37a   :  { %v351_v52 = vpop.xlane.xlu0 %350 }
 0x37b   :  { %491 = vpow2.f32 %v425_v51  ;;  %v355_v53 = vadd.f32 %v353_v48, %v351_v52 }
 0x37d   :  { %v426_v54 = vmul.f32 -1.442695, %v355_v53 }
 0x37f   :  { %493 = vpow2.f32 %v426_v54 }
 0x388   :  { %v492_v55 = vpop.eup %491 }
 0x389   :  { %v362_v56 = vadd.f32 1.0, %v492_v55 }
 0x38b   :  { %495 = vrcp.f32 %v362_v56 }
 0x38c   :  { %v494_v57 = vpop.eup %493 }
 0x38d   :  { %v363_v58 = vadd.f32 1.0, %v494_v57 }
 0x38f   :  { %497 = vrcp.f32 %v363_v58 }
 0x398   :  { %v496_v59 = vpop.eup %495 }
 0x399   :  { %v373_v60 = vrot.slane %v496_v59, %v318_v35 }
 0x39b   :  { %381 = vst.msk [vmem:[#allocation8] sm:$0x1] %vm380_vm3, %v373_v60 }
 0x39c   :  { %v498_v61 = vpop.eup %497 }
 0x39d   :  { %v377_v62 = vrot.slane %v498_v61, %v318_v35 }
 0x39f   :  { %382 = vst.msk [vmem:[#allocation8 + $0x1] sm:$0x1] %vm380_vm3, %v377_v62 }
 0x3a0   :  { %570 = shalt.err (!%p567_p5)
}
 0x3a1   :  { %s596_s7 = smov 16   ;;  %s597_s8 = smov 1  }
 0x3a2   :  { %396 = dma.vmem_to_hbm [thread:$0]  %s391_s6, 32, %s664_s3, [#allocation5], %s596_s7, %s596_s7, %s597_s8  }
 0x3a3   :  { %583 = dma.done.wait [#allocation5], 32  }
 0x3a4   :  { %584 = vsyncadd [#allocation5], 4294967264 }
 0x3a5   :  { %585 = dma.done.wait [#allocation10], 256  }
 0x3a6   :  { %586 = vsyncadd [#allocation10], 4294967040 }
 0x3a7   :  { %415 = vsyncpa [#allocation4], 1 }
 0x3a8   :  { %416 = vsyncpa [#allocation7], 1 }
 0x3a9   :  { %417 = vsyncpa [#allocation5], 1 }
 0x3aa   :  { %418 = vsyncpa [#allocation10], 1 }

</bundles_post_ra>
